<compile_context>
chip_gen: v7x
topology: tpu7x:2x2x1
jax: 0.10.0
libtpu: 0.0.40
codegen_flags: <defaults>
</compile_context>

<pallas_src>
import jax
import jax.numpy as jnp
from jax.experimental import pallas as pl
from jax.experimental.pallas import tpu as pltpu

LN_EPS = 1e-5    # torch.nn.LayerNorm default eps
ENC_EPS = 1e-6   # VariationalEncoder.encode eps


def _sigmoid(x):
    # numerically stable: exp() only ever sees a non-positive argument
    e = jnp.exp(-jnp.abs(x))
    return jnp.where(x >= 0, 1.0 / (1.0 + e), e / (1.0 + e))


def _softplus(x):
    # numerically stable softplus
    return jnp.maximum(x, 0.0) + jnp.log1p(jnp.exp(-jnp.abs(x)))


def _round_up(a, m):
    return ((a + m - 1) // m) * m


# ---------------------------------------------------------------------------
# Fused kernel: whole VariationalEncoder forward for one batch tile.
# ---------------------------------------------------------------------------
def _make_kernel(total_rows, tile_b, out_dim, split_w2):
    def _trunk(x_ref, w1_ref, bgb_ref):
        # Linear(input_dim, hidden): bf16 x bf16 -> f32 acc on the MXU
        h = jnp.dot(x_ref[...], w1_ref[...],
                    preferred_element_type=jnp.float32)
        bgb = bgb_ref[...]                       # (3, hidden): b1 / gamma / beta
        h = h + bgb[0:1, :]
        # LayerNorm(hidden)  (biased variance, as in PyTorch)
        mu = jnp.mean(h, axis=-1, keepdims=True)
        var = jnp.mean((h - mu) ** 2, axis=-1, keepdims=True)
        hn = (h - mu) * jax.lax.rsqrt(var + LN_EPS)
        hn = hn * bgb[1:2, :] + bgb[2:3, :]
        # SiLU (Dropout is identity in eval mode)
        hs = hn * _sigmoid(hn)
        return hs.astype(jnp.bfloat16)           # bf16 LHS for the 2nd MXU pass

    def _tail(mean, logvar, noise_ref, z_ref, kl_ref):
        scale = _softplus(logvar) + ENC_EPS
        # reparameterization: z = mean + diag(scale) @ eps
        z_ref[...] = mean + scale * noise_ref[...]
        # per-row KL( N(mean, diag(scale^2)) || N(0, I) ); garbage rows of a
        # partial last tile are masked out before the cross-row reduce.
        kl_rows = 0.5 * jnp.sum(
            scale * scale + mean * mean - 1.0 - 2.0 * jnp.log(scale),
            axis=-1, keepdims=True)                                # (tile_b, 1)
        rows = jax.lax.broadcasted_iota(jnp.int32, (tile_b, 1), 0)
        valid = (pl.program_id(0) * tile_b + rows) < total_rows
        kl_rows = jnp.where(valid, kl_rows, 0.0)
        kl_ref[...] = jnp.sum(kl_rows, axis=0, keepdims=True)      # (1, 1)

    if split_w2:
        # out_dim is a multiple of 128: pre-split halves are lane-aligned.
        def kernel(x_ref, w1_ref, bgb_ref, w2m_ref, w2v_ref, b2mv_ref,
                   noise_ref, z_ref, kl_ref):
            hs = _trunk(x_ref, w1_ref, bgb_ref)
            b2mv = b2mv_ref[...]                 # (2, out_dim): b2_mean / b2_logvar
            mean = jnp.dot(hs, w2m_ref[...],
                           preferred_element_type=jnp.float32) + b2mv[0:1, :]
            logvar = jnp.dot(hs, w2v_ref[...],
                             preferred_element_type=jnp.float32) + b2mv[1:2, :]
            _tail(mean, logvar, noise_ref, z_ref, kl_ref)
    else:
        # 2*out_dim fits well within the lane tile: one fused dot, split in-vreg.
        def kernel(x_ref, w1_ref, bgb_ref, w2_ref, b2_ref,
                   noise_ref, z_ref, kl_ref):
            hs = _trunk(x_ref, w1_ref, bgb_ref)
            y = jnp.dot(hs, w2_ref[...],
                        preferred_element_type=jnp.float32) + b2_ref[...]
            mean, logvar = y[:, :out_dim], y[:, out_dim:]
            _tail(mean, logvar, noise_ref, z_ref, kl_ref)

    return kernel


# ---------------------------------------------------------------------------
# Wrapper: batch-gridded, weights VMEM-resident (single-buffered), per-tile KL.
# ---------------------------------------------------------------------------
def variational_encoder_forward(x, params, noise, *, tile_b=None):
    w1, b1, gamma, beta, w2, b2 = params
    B, in_dim = x.shape
    hidden = w1.shape[1]
    out_dim = noise.shape[-1]
    assert w2.shape == (hidden, 2 * out_dim)

    split_w2 = (out_dim % 128 == 0)

    # --- trace-time parameter prep (bf16 MXU operands, packed small vectors) --
    x_bf = x.astype(jnp.bfloat16)                 # halves activation DMA bytes
    w1_bf = w1.astype(jnp.bfloat16)
    bgb = jnp.concatenate([b1, gamma, beta], axis=0)            # (3, hidden) f32
    if split_w2:
        w2m = w2[:, :out_dim].astype(jnp.bfloat16)
        w2v = w2[:, out_dim:].astype(jnp.bfloat16)
        b2mv = jnp.concatenate([b2[:, :out_dim], b2[:, out_dim:]], axis=0)
        weight_inputs = (w1_bf, bgb, w2m, w2v, b2mv)
    else:
        w2_bf = w2.astype(jnp.bfloat16)
        weight_inputs = (w1_bf, bgb, w2_bf, b2)

    weight_bytes = (in_dim * hidden * 2 + 3 * hidden * 4
                    + hidden * 2 * out_dim * 2 + 2 * out_dim * 4)

    # --- tile selection (generation-aware) ------------------------------------
    # per-row streamed bytes: double-buffered x (bf16) / noise (f32) / z (f32)
    # plus single-buffered f32 intermediates (h / hn / hs) of width `hidden`.
    per_row = 2 * (2 * in_dim + 4 * out_dim + 4 * out_dim) + 4 * 3 * hidden
    if tile_b is None:
        budget = 12 << 20                     # fits v5e's 16 MiB scoped default
        cap = (budget - weight_bytes) // max(per_row, 1)
        cap = max(8, min((int(cap) // 8) * 8, 1024))   # v6e sweet spot: 512-1024
        if B > 16:
            # keep >= 2 grid steps so v7x megacore uses both TensorCores
            tile_b = min(cap, _round_up((B + 1) // 2, 16))
        else:
            tile_b = min(cap, _round_up(B, 8))
    num_tiles = pl.cdiv(B, tile_b)

    vmem_limit = int(min(32 << 20,
                         max(8 << 20,
                             2 * (weight_bytes + tile_b * per_row) + (2 << 20))))

    kernel = _make_kernel(B, tile_b, out_dim, split_w2)

    def row_spec(cols):
        return pl.BlockSpec((tile_b, cols), lambda i: (i, 0))

    # Untiled, whole-array VMEM residence: copied in once, no double-buffering.
    resident = pl.BlockSpec(memory_space=pltpu.MemorySpace.VMEM)

    z, kl_tiles = pl.pallas_call(
        kernel,
        out_shape=(jax.ShapeDtypeStruct((B, out_dim), jnp.float32),
                   jax.ShapeDtypeStruct((num_tiles, 1), jnp.float32)),
        grid=(num_tiles,),
        in_specs=[row_spec(in_dim)] + [resident] * len(weight_inputs)
                 + [row_spec(out_dim)],
        out_specs=(row_spec(out_dim),
                   pl.BlockSpec((1, 1), lambda i: (i, 0))),
        compiler_params=pltpu.CompilerParams(
            dimension_semantics=("parallel",),
            vmem_limit_bytes=vmem_limit),
    )(x_bf, *weight_inputs, noise)

    loss_kl = jnp.sum(kl_tiles) / B       # tiny epilogue reduce over the tiles
    return z, loss_kl


# ---------------------------------------------------------------------------
# Pure-JAX f32 reference (for correctness check)
# ---------------------------------------------------------------------------
def variational_encoder_reference(x, params, noise):
    w1, b1, gamma, beta, w2, b2 = params
    out_dim = noise.shape[-1]
    h = x @ w1 + b1
    mu = jnp.mean(h, axis=-1, keepdims=True)
    var = jnp.mean((h - mu) ** 2, axis=-1, keepdims=True)
    hn = (h - mu) / jnp.sqrt(var + LN_EPS) * gamma + beta
    hs = hn * jax.nn.sigmoid(hn)
    y = hs @ w2 + b2
    mean, logvar = y[:, :out_dim], y[:, out_dim:]
    scale = jax.nn.softplus(logvar) + ENC_EPS
    z = mean + scale * noise
    kl = 0.5 * jnp.sum(scale * scale + mean * mean - 1.0 - 2.0 * jnp.log(scale),
                       axis=-1)
    return z, jnp.mean(kl)


# ---------------------------------------------------------------------------
# Parameter construction (mimics PyTorch default Linear init, deterministic)
# ---------------------------------------------------------------------------
def init_linear(key, in_dim, out_dim):
    k1, k2 = jax.random.split(key)
    bound = 1.0 / jnp.sqrt(jnp.float32(in_dim))
    w = jax.random.uniform(k1, (in_dim, out_dim), jnp.float32, -bound, bound)
    b = jax.random.uniform(k2, (1, out_dim), jnp.float32, -bound, bound)
    return w, b


def init_encoder(key, in_dim, hidden_dim, out_dim):
    k1, k2 = jax.random.split(key)
    w1, b1 = init_linear(k1, in_dim, hidden_dim)
    gamma = jnp.ones((1, hidden_dim), jnp.float32)
    beta = jnp.zeros((1, hidden_dim), jnp.float32)
    w2, b2 = init_linear(k2, hidden_dim, 2 * out_dim)
    return (w1, b1, gamma, beta, w2, b2)


# ---------------------------------------------------------------------------
if __name__ == "__main__":
    B = 8
    input_dim = 24
    hidden_dim = 32
    output_dim = 16

    root = jax.random.PRNGKey(0)
    kx, kn, kp = jax.random.split(root, 3)

    x = jax.random.normal(kx, (B, input_dim), jnp.float32)
    noise = jax.random.normal(kn, (B, output_dim), jnp.float32)  # explicit rsample eps
    params = init_encoder(kp, input_dim, hidden_dim, output_dim)

    z, loss_kl = variational_encoder_forward(x, params, noise)
    jax.block_until_ready(z)
    jax.block_until_ready(loss_kl)

    # shape / sanity checks
    assert z.shape == (B, output_dim)
    assert loss_kl.shape == ()
    assert bool(jnp.all(jnp.isfinite(z)))
    assert bool(jnp.isfinite(loss_kl))

    # correctness against pure-JAX f32 reference (tolerance loosened for the
    # bf16 MXU operands inside the kernel)
    z_ref, kl_ref = variational_encoder_reference(x, params, noise)
    assert bool(jnp.allclose(z, z_ref, rtol=3e-2, atol=3e-2))
    assert bool(jnp.allclose(loss_kl, kl_ref, rtol=3e-2, atol=3e-2))

    print("KERNEL_OK")
</pallas_src>

<mosaic_0001>
module attributes {stable_mosaic.version = 11 : i64} {
  func.func @kernel(%arg0: i32, %arg1: memref<8x24xbf16, #tpu.memory_space<vmem>>, %arg2: memref<24x32xbf16, #tpu.memory_space<vmem>>, %arg3: memref<3x32xf32, #tpu.memory_space<vmem>>, %arg4: memref<32x32xbf16, #tpu.memory_space<vmem>>, %arg5: memref<1x32xf32, #tpu.memory_space<vmem>>, %arg6: memref<8x16xf32, #tpu.memory_space<vmem>>, %arg7: memref<8x16xf32, #tpu.memory_space<vmem>>, %arg8: memref<1x1xf32, #tpu.memory_space<vmem>>) attributes {dimension_semantics = [#tpu.dimension_semantics<parallel>], iteration_bounds = array<i64: 1>, scalar_prefetch = 0 : i64, scratch_operands = 0 : i64, tpu.core_type = #tpu.core_type<tc>, window_params = [{transform_indices = @transform_0, window_bounds = array<i64: 8, 24>}, {pipeline_mode = #tpu.pipeline_mode<synchronous>, transform_indices = @transform_1, window_bounds = array<i64: 24, 32>}, {pipeline_mode = #tpu.pipeline_mode<synchronous>, transform_indices = @transform_2, window_bounds = array<i64: 3, 32>}, {pipeline_mode = #tpu.pipeline_mode<synchronous>, transform_indices = @transform_3, window_bounds = array<i64: 32, 32>}, {pipeline_mode = #tpu.pipeline_mode<synchronous>, transform_indices = @transform_4, window_bounds = array<i64: 1, 32>}, {transform_indices = @transform_5, window_bounds = array<i64: 8, 16>}, {transform_indices = @transform_6, window_bounds = array<i64: 8, 16>}, {transform_indices = @transform_7, window_bounds = array<i64: 1, 1>}]} {
    %c0 = arith.constant 0 : index
    %c0_0 = arith.constant 0 : index
    %0 = vector.load %arg1[%c0, %c0_0] : memref<8x24xbf16, #tpu.memory_space<vmem>>, vector<8x24xbf16>
    %c0_1 = arith.constant 0 : index
    %c0_2 = arith.constant 0 : index
    %1 = vector.load %arg2[%c0_1, %c0_2] : memref<24x32xbf16, #tpu.memory_space<vmem>>, vector<24x32xbf16>
    %cst = arith.constant dense<0.000000e+00> : vector<8x32xf32>
    %2 = tpu.matmul %0, %1, %cst {dimension_numbers = #tpu.dot_dimension_numbers<[1], [0], [0], [1], [0, 0, 1, 1], [], []>} : vector<8x24xbf16>, vector<24x32xbf16>, vector<8x32xf32> -> vector<8x32xf32>
    %c0_3 = arith.constant 0 : index
    %c0_4 = arith.constant 0 : index
    %3 = vector.load %arg3[%c0_3, %c0_4] : memref<3x32xf32, #tpu.memory_space<vmem>>, vector<3x32xf32>
    %4 = vector.extract_strided_slice %3 {offsets = [0, 0], sizes = [1, 32], strides = [1, 1]} : vector<3x32xf32> to vector<1x32xf32>
    %5 = vector.broadcast %4 : vector<1x32xf32> to vector<8x32xf32>
    %6 = arith.addf %2, %5 : vector<8x32xf32>
    %cst_5 = arith.constant dense<0.000000e+00> : vector<8xf32>
    %7 = vector.multi_reduction <add>, %6, %cst_5 [1] : vector<8x32xf32> to vector<8xf32>
    %8 = vector.shape_cast %7 : vector<8xf32> to vector<8x1xf32>
    %cst_6 = arith.constant 3.200000e+01 : f32
    %9 = vector.broadcast %cst_6 : f32 to vector<8x1xf32>
    %10 = arith.divf %8, %9 : vector<8x1xf32>
    %11 = vector.broadcast %10 : vector<8x1xf32> to vector<8x32xf32>
    %12 = arith.subf %6, %11 : vector<8x32xf32>
    %13 = arith.mulf %12, %12 : vector<8x32xf32>
    %cst_7 = arith.constant dense<0.000000e+00> : vector<8xf32>
    %14 = vector.multi_reduction <add>, %13, %cst_7 [1] : vector<8x32xf32> to vector<8xf32>
    %15 = vector.shape_cast %14 : vector<8xf32> to vector<8x1xf32>
    %cst_8 = arith.constant 3.200000e+01 : f32
    %16 = vector.broadcast %cst_8 : f32 to vector<8x1xf32>
    %17 = arith.divf %15, %16 : vector<8x1xf32>
    %18 = vector.broadcast %10 : vector<8x1xf32> to vector<8x32xf32>
    %19 = arith.subf %6, %18 : vector<8x32xf32>
    %cst_9 = arith.constant 9.99999974E-6 : f32
    %20 = vector.broadcast %cst_9 : f32 to vector<8x1xf32>
    %21 = arith.addf %17, %20 : vector<8x1xf32>
    %22 = math.rsqrt %21 : vector<8x1xf32>
    %23 = vector.broadcast %22 : vector<8x1xf32> to vector<8x32xf32>
    %24 = arith.mulf %19, %23 : vector<8x32xf32>
    %25 = vector.extract_strided_slice %3 {offsets = [1, 0], sizes = [1, 32], strides = [1, 1]} : vector<3x32xf32> to vector<1x32xf32>
    %26 = vector.broadcast %25 : vector<1x32xf32> to vector<8x32xf32>
    %27 = arith.mulf %24, %26 : vector<8x32xf32>
    %28 = vector.extract_strided_slice %3 {offsets = [2, 0], sizes = [1, 32], strides = [1, 1]} : vector<3x32xf32> to vector<1x32xf32>
    %29 = vector.broadcast %28 : vector<1x32xf32> to vector<8x32xf32>
    %30 = arith.addf %27, %29 : vector<8x32xf32>
    %31 = math.absf %30 : vector<8x32xf32>
    %cst_10 = arith.constant 0.000000e+00 : f32
    %32 = vector.broadcast %cst_10 : f32 to vector<8x32xf32>
    %33 = arith.subf %32, %31 : vector<8x32xf32>
    %34 = math.exp %33 : vector<8x32xf32>
    %cst_11 = arith.constant 0.000000e+00 : f32
    %35 = vector.broadcast %cst_11 : f32 to vector<8x32xf32>
    %36 = arith.cmpf oge, %30, %35 : vector<8x32xf32>
    %cst_12 = arith.constant 1.000000e+00 : f32
    %37 = vector.broadcast %cst_12 : f32 to vector<8x32xf32>
    %38 = arith.addf %37, %34 : vector<8x32xf32>
    %cst_13 = arith.constant 1.000000e+00 : f32
    %39 = vector.broadcast %cst_13 : f32 to vector<8x32xf32>
    %40 = arith.divf %39, %38 : vector<8x32xf32>
    %cst_14 = arith.constant 1.000000e+00 : f32
    %41 = vector.broadcast %cst_14 : f32 to vector<8x32xf32>
    %42 = arith.addf %41, %34 : vector<8x32xf32>
    %43 = arith.divf %34, %42 : vector<8x32xf32>
    %44 = arith.select %36, %40, %43 : vector<8x32xi1>, vector<8x32xf32>
    %45 = arith.mulf %30, %44 : vector<8x32xf32>
    %46 = arith.truncf %45 : vector<8x32xf32> to vector<8x32xbf16>
    %c0_15 = arith.constant 0 : index
    %c0_16 = arith.constant 0 : index
    %47 = vector.load %arg4[%c0_15, %c0_16] : memref<32x32xbf16, #tpu.memory_space<vmem>>, vector<32x32xbf16>
    %cst_17 = arith.constant dense<0.000000e+00> : vector<8x32xf32>
    %48 = tpu.matmul %46, %47, %cst_17 {dimension_numbers = #tpu.dot_dimension_numbers<[1], [0], [0], [1], [0, 0, 1, 1], [], []>} : vector<8x32xbf16>, vector<32x32xbf16>, vector<8x32xf32> -> vector<8x32xf32>
    %c0_18 = arith.constant 0 : index
    %c0_19 = arith.constant 0 : index
    %49 = vector.load %arg5[%c0_18, %c0_19] : memref<1x32xf32, #tpu.memory_space<vmem>>, vector<1x32xf32>
    %50 = vector.broadcast %49 : vector<1x32xf32> to vector<8x32xf32>
    %51 = arith.addf %48, %50 : vector<8x32xf32>
    %52 = vector.extract_strided_slice %51 {offsets = [0, 0], sizes = [8, 16], strides = [1, 1]} : vector<8x32xf32> to vector<8x16xf32>
    %53 = vector.extract_strided_slice %51 {offsets = [0, 16], sizes = [8, 16], strides = [1, 1]} : vector<8x32xf32> to vector<8x16xf32>
    %cst_20 = arith.constant 0.000000e+00 : f32
    %54 = vector.broadcast %cst_20 : f32 to vector<8x16xf32>
    %55 = arith.maximumf %53, %54 : vector<8x16xf32>
    %56 = math.absf %53 : vector<8x16xf32>
    %cst_21 = arith.constant 0.000000e+00 : f32
    %57 = vector.broadcast %cst_21 : f32 to vector<8x16xf32>
    %58 = arith.subf %57, %56 : vector<8x16xf32>
    %59 = math.exp %58 : vector<8x16xf32>
    %60 = math.log1p %59 : vector<8x16xf32>
    %61 = arith.addf %55, %60 : vector<8x16xf32>
    %cst_22 = arith.constant 9.99999997E-7 : f32
    %62 = vector.broadcast %cst_22 : f32 to vector<8x16xf32>
    %63 = arith.addf %61, %62 : vector<8x16xf32>
    %c0_23 = arith.constant 0 : index
    %c0_24 = arith.constant 0 : index
    %64 = vector.load %arg6[%c0_23, %c0_24] : memref<8x16xf32, #tpu.memory_space<vmem>>, vector<8x16xf32>
    %65 = arith.mulf %63, %64 : vector<8x16xf32>
    %66 = arith.addf %52, %65 : vector<8x16xf32>
    %c0_25 = arith.constant 0 : index
    %c0_26 = arith.constant 0 : index
    %67 = vector.load %arg7[%c0_25, %c0_26] : memref<8x16xf32, #tpu.memory_space<vmem>>, vector<8x16xf32>
    tpu.vector_store %arg7[%c0_25, %c0_26], %66 {strides = array<i32>} : memref<8x16xf32, #tpu.memory_space<vmem>>, vector<8x16xf32>,
    %68 = arith.mulf %63, %63 : vector<8x16xf32>
    %69 = arith.mulf %52, %52 : vector<8x16xf32>
    %70 = arith.addf %68, %69 : vector<8x16xf32>
    %cst_27 = arith.constant 1.000000e+00 : f32
    %71 = vector.broadcast %cst_27 : f32 to vector<8x16xf32>
    %72 = arith.subf %70, %71 : vector<8x16xf32>
    %73 = math.log %63 : vector<8x16xf32>
    %cst_28 = arith.constant 2.000000e+00 : f32
    %74 = vector.broadcast %cst_28 : f32 to vector<8x16xf32>
    %75 = arith.mulf %74, %73 : vector<8x16xf32>
    %76 = arith.subf %72, %75 : vector<8x16xf32>
    %cst_29 = arith.constant dense<0.000000e+00> : vector<8xf32>
    %77 = vector.multi_reduction <add>, %76, %cst_29 [1] : vector<8x16xf32> to vector<8xf32>
    %78 = vector.shape_cast %77 : vector<8xf32> to vector<8x1xf32>
    %cst_30 = arith.constant 5.000000e-01 : f32
    %79 = vector.broadcast %cst_30 : f32 to vector<8x1xf32>
    %80 = arith.mulf %79, %78 : vector<8x1xf32>
    %81 = tpu.iota {dimensions = array<i32: 0>} : vector<8x1xi32>
    %c8_i32 = arith.constant 8 : i32
    %82 = arith.muli %arg0, %c8_i32 : i32
    %83 = vector.broadcast %82 : i32 to vector<8x1xi32>
    %84 = arith.addi %83, %81 : vector<8x1xi32>
    %c8_i32_31 = arith.constant 8 : i32
    %85 = vector.broadcast %c8_i32_31 : i32 to vector<8x1xi32>
    %86 = arith.cmpi slt, %84, %85 : vector<8x1xi32>
    %cst_32 = arith.constant 0.000000e+00 : f32
    %87 = vector.broadcast %cst_32 : f32 to vector<8x1xf32>
    %88 = arith.select %86, %80, %87 : vector<8x1xi1>, vector<8x1xf32>
    %cst_33 = arith.constant dense<0.000000e+00> : vector<1xf32>
    %89 = vector.multi_reduction <add>, %88, %cst_33 [0] : vector<8x1xf32> to vector<1xf32>
    %90 = vector.shape_cast %89 : vector<1xf32> to vector<1x1xf32>
    %c0_34 = arith.constant 0 : index
    %c0_35 = arith.constant 0 : index
    %91 = vector.load %arg8[%c0_34, %c0_35] : memref<1x1xf32, #tpu.memory_space<vmem>>, vector<1x1xf32>
    tpu.vector_store %arg8[%c0_34, %c0_35], %90 {strides = array<i32>} : memref<1x1xf32, #tpu.memory_space<vmem>>, vector<1x1xf32>,
    return
  }
  func.func @transform_0(%arg0: i32) -> (i32, i32) {
    %c0_i32 = arith.constant 0 : i32
    %c0_i32_0 = arith.constant 0 : i32
    return %arg0, %c0_i32 : i32, i32
  }
  func.func @transform_1(%arg0: i32) -> (i32, i32) {
    %c0_i32 = arith.constant 0 : i32
    %c0_i32_0 = arith.constant 0 : i32
    %c0_i32_1 = arith.constant 0 : i32
    return %c0_i32, %c0_i32_0 : i32, i32
  }
  func.func @transform_2(%arg0: i32) -> (i32, i32) {
    %c0_i32 = arith.constant 0 : i32
    %c0_i32_0 = arith.constant 0 : i32
    %c0_i32_1 = arith.constant 0 : i32
    return %c0_i32, %c0_i32_0 : i32, i32
  }
  func.func @transform_3(%arg0: i32) -> (i32, i32) {
    %c0_i32 = arith.constant 0 : i32
    %c0_i32_0 = arith.constant 0 : i32
    %c0_i32_1 = arith.constant 0 : i32
    return %c0_i32, %c0_i32_0 : i32, i32
  }
  func.func @transform_4(%arg0: i32) -> (i32, i32) {
    %c0_i32 = arith.constant 0 : i32
    %c0_i32_0 = arith.constant 0 : i32
    %c0_i32_1 = arith.constant 0 : i32
    return %c0_i32, %c0_i32_0 : i32, i32
  }
  func.func @transform_5(%arg0: i32) -> (i32, i32) {
    %c0_i32 = arith.constant 0 : i32
    %c0_i32_0 = arith.constant 0 : i32
    return %arg0, %c0_i32 : i32, i32
  }
  func.func @transform_6(%arg0: i32) -> (i32, i32) {
    %c0_i32 = arith.constant 0 : i32
    %c0_i32_0 = arith.constant 0 : i32
    return %arg0, %c0_i32 : i32, i32
  }
  func.func @transform_7(%arg0: i32) -> (i32, i32) {
    %c0_i32 = arith.constant 0 : i32
    %c0_i32_0 = arith.constant 0 : i32
    return %arg0, %c0_i32 : i32, i32
  }
}

</mosaic_0001>

<bundles_post_ra>
// kernel: tpu_custom_call.1
= control target key start
LH: loop header
LB: loop body
LE: loop exit
PB: predicated region body
PF: predicated region fallthrough
CT: control target
= control target key end

     0   :  { %13 = vsyncpa [#allocation3], 0  ;;  %s636_s0 = inlined_call_operand.hbm [shape: bf16[8,24], index: 0, kind: input, shape index: {}]   ;;  %s637_s1 = inlined_call_operand.hbm [shape: bf16[24,32], index: 1, kind: input, shape index: {}]   ;;  %s638_s2 = inlined_call_operand.vmem [shape: f32[3,32], index: 2, kind: input, shape index: {}]   ;;  %s639_s3 = inlined_call_operand.hbm [shape: bf16[32,32], index: 3, kind: input, shape index: {}]   ;;  %s640_s4 = inlined_call_operand.vmem [shape: f32[1,32], index: 4, kind: input, shape index: {}]   ;;  %s641_s5 = inlined_call_operand.vmem [shape: f32[8,16], index: 5, kind: input, shape index: {}]   ;;  %s642_s6 = inlined_call_operand.hbm [shape: f32[8,16], index: 6, kind: output, shape index: {0}]   ;;  %s643_s7 = inlined_call_operand.hbm [shape: f32[1,1], index: 7, kind: output, shape index: {1}]  }
   0x1   :  { %14 = vsyncpa [#allocation6], 0 }
   0x2   :  { %15 = vsyncpa [#allocation4], 0 }
   0x3   :  { %16 = vsyncpa [#allocation10], 0  ;;  %s505_s24 = smov [#allocation5]   ;;  %s387_s28 = scalar_lea.hbm %s637_s1, 192 }
   0x4   :  { %s32_s25 = sshll.u32 %s505_s24, 4  ;;  %p388_p0 = scmp.ne.s32.totalorder %s637_s1, %s387_s28  ;;  %s33_s25 = int_to_ptr.vmem [resolvable:$true] %s32_s25 }
   0x5   :  { %p391_p1 = scmp.lt.u32.totalorder %s387_s28, %s637_s1 }
   0x7   :  { %p393_p2 = pnand %p391_p1, %p388_p0 }
   0x9   :  { %396 = shalt.err (!%p393_p2)
}
   0xa   :  { %s397_s10 = scalar_lea.vmem %s33_s25, 192  ;;  %p402_p4 = scmp.lt.s32.totalorder %s33_s25, %s33_s25 }
   0xb   :  { %p398_p3 = scmp.ne.s32.totalorder %s33_s25, %s397_s10  ;;  %p403_p5 = scmp.lt.s32.totalorder %s397_s10, %s397_s10 }
   0xd   :  { %p404_p6 = por %p403_p5, %p402_p4 }
   0xf   :  { %p405_p7 = pnand %p404_p6, %p398_p3 }
  0x11   :  { %408 = shalt.err (!%p405_p7)
}
  0x12   :  { %s506_s11 = smov 64   ;;  %s507_s12 = smov 4  }
  0x13   :  { %38 = dma.hbm_to_vmem [thread:$0]  %s637_s1, 192, %s33_s25, [#allocation6], %s506_s11, %s506_s11, %s507_s12  }
  0x14   :  { %s508_s15 = smov [#allocation2]   ;;  %s509_s17 = smov [#allocation7]  }
  0x15   :  { %s23_s16 = sshll.u32 %s508_s15, 4  ;;  %s46_s18 = sshll.u32 %s509_s17, 4  ;;  %s24_s16 = int_to_ptr.vmem [resolvable:$true] %s23_s16  ;;  %s47_s18 = int_to_ptr.vmem [resolvable:$true] %s46_s18 }
  0x16   :  { %s409_s21 = scalar_lea.hbm %s636_s0, 64 }
  0x17   :  { %p410_p8 = scmp.ne.s32.totalorder %s636_s0, %s409_s21  ;;  %p413_p9 = scmp.lt.u32.totalorder %s409_s21, %s636_s0 }
  0x19   :  { %p415_p10 = pnand %p413_p9, %p410_p8 }
  0x1b   :  { %418 = shalt.err (!%p415_p10)
}
  0x1c   :  { %s419_s1 = scalar_lea.vmem %s24_s16, 64  ;;  %p424_p12 = scmp.lt.s32.totalorder %s24_s16, %s24_s16 }
  0x1d   :  { %p420_p11 = scmp.ne.s32.totalorder %s24_s16, %s419_s1  ;;  %p425_p13 = scmp.lt.s32.totalorder %s419_s1, %s419_s1 }
  0x1f   :  { %p426_p0 = por %p425_p13, %p424_p12 }
  0x21   :  { %p427_p1 = pnand %p426_p0, %p420_p11 }
  0x23   :  { %430 = shalt.err (!%p427_p1)
}
  0x24   :  { %26 = dma.hbm_to_vmem [thread:$0]  %s636_s0, 64, %s24_s16, [#allocation3]  }
  0x25   :  { %s431_s30 = scalar_lea.hbm %s639_s3, 256 }
  0x26   :  { %p432_p2 = scmp.ne.s32.totalorder %s639_s3, %s431_s30  ;;  %p435_p3 = scmp.lt.u32.totalorder %s431_s30, %s639_s3 }
  0x28   :  { %p437_p4 = pnand %p435_p3, %p432_p2 }
  0x2a   :  { %440 = shalt.err (!%p437_p4)
}
  0x2b   :  { %s441_s14 = scalar_lea.vmem %s47_s18, 256  ;;  %p446_p6 = scmp.lt.s32.totalorder %s47_s18, %s47_s18 }
  0x2c   :  { %p442_p5 = scmp.ne.s32.totalorder %s47_s18, %s441_s14  ;;  %p447_p7 = scmp.lt.s32.totalorder %s441_s14, %s441_s14 }
  0x2e   :  { %p448_p8 = por %p447_p7, %p446_p6 }
  0x30   :  { %p449_p9 = pnand %p448_p8, %p442_p5 }
  0x32   :  { %452 = shalt.err (!%p449_p9)
}
  0x33   :  { %52 = dma.hbm_to_vmem [thread:$0]  %s639_s3, 256, %s47_s18, [#allocation6], %s506_s11, %s506_s11, %s507_s12  }
  0x34   :  { %497 = dma.done.wait [#allocation3], 64  }
  0x35   :  { %498 = vsyncadd [#allocation3], 4294967232 }
  0x36   :  { %499 = dma.done.wait [#allocation6], 448  }
  0x37   :  { %500 = vsyncadd [#allocation6], 4294966848  ;;  %v510_v0 = vmov 0.0   ;;  %vm511_vm0 = vmmov 0   ;;  %v371_v1 = vld [vmem:[#allocation5] sm:$0xff]   ;;  %vm89_vm1 = vcmask 1043456   ;;  %v72_v5 = vlaneseq }
  0x38   :  { %344 = vmatprep.subr.bf16.mxu0 %v510_v0  ;;  %348 = vmatprep.mubr.msk.bf16.mxu0 %vm511_vm0, %v510_v0  ;;  %v372_v2 = vld [vmem:[#allocation5 + $0x8] ss:$0 sps:$4 sm:$0xff]   ;;  %v67_v4 = vld [vmem:[#allocation2] sm:$0xf]  ;;  %vm85_vm2 = vcmask 195584   ;;  %vm133_vm3 = vcmask 261120  }
  0x39   :  { %352 = vmatprep.subr.bf16.mxu1 %v510_v0  ;;  %356 = vmatprep.mubr.msk.bf16.mxu1 %vm511_vm0, %v510_v0  ;;  %v91_v3 = vsel %vm89_vm1, %v372_v2, 0  ;;  %v73_v6 = vshrl.u32 %v72_v5, 7  ;;  %v71_v8 = vld [vmem:[%s638_s2] sm:$0x7]  ;;  %v373_v21 = vld [vmem:[#allocation7] sm:$0xff]   ;;  %s512_s16 = smov 16  }
  0x3a   :  { %345 = vmatpush3.bf16.msra.mxu0 %v371_v1  ;;  %353 = vmatpush3.bf16.msra.mxu1 %v373_v21  ;;  %v374_v22 = vld [vmem:[#allocation7 + $0x8] sm:$0xff]   ;;  %vm263_vm6 = vcmask 130048   ;;  %s514_s18 = smov [#allocation8]  }
  0x3b   :  { %346 = vmatprep.subr.bf16.mxu0 %v510_v0  ;;  %v74_v7 = vsub.s32 0, %v73_v6  ;;  %354 = vmatprep.subr.bf16.mxu1 %v510_v0  ;;  %v252_v23 = vld [vmem:[%s641_s5] sm:$0xff]  ;;  %v150_v27 = vsub.s32 1, %v73_v6  ;;  %v155_v28 = vsub.s32 2, %v73_v6  ;;  %s306_s19 = sshll.u32 %s514_s18, 4  ;;  %s307_s19 = int_to_ptr.vmem [resolvable:$true] %s306_s19 }
  0x3c   :  { %v333_v45 = vld [vmem:[%s640_s4] ss:$0 sm:$0xff]  ;;  %s513_s4 = smov 112   ;;  %s453_s20 = scalar_lea.vmem %s307_s19, 128 }
  0x3d   :  { %v75_v9 = vrot.slane %v71_v8, %v74_v7  ;;  %v151_v29 = vrot.slane %v71_v8, %v150_v27  ;;  %v156_v31 = vrot.slane %v71_v8, %v155_v28  ;;  %p454_p10 = scmp.ne.s32.totalorder %s307_s19, %s453_s20  ;;  %p458_p11 = scmp.lt.s32.totalorder %s307_s19, %s307_s19 }
  0x3e   :  { %347 = vmatpush3.bf16.msra.mxu0 %v91_v3  ;;  %355 = vmatpush3.bf16.msra.mxu1 %v374_v22  ;;  %p459_p12 = scmp.lt.s32.totalorder %s453_s20, %s453_s20 }
  0x40   :  { %p460_p13 = por %p459_p12, %p458_p11 }
  0x41   :  { %349 = vmatmul.mubr.msk.bf16.vlgmr.msra.gmra.mrb[0].mxu0 %vm85_vm2, %v67_v4 }
  0x42   :  { %p461_p0 = pnand %p460_p13, %p454_p10 }
 0x114   :  { %v127_v10 = vpop.f32.mrb[0].mxu0 }
 0x115   :  { %v128_v11 = vadd.f32 %v127_v10, %v75_v9  ;;  %v350_v12 = vpop.f32.mrb[1].mxu0 }
 0x116   :  { %v130_v13 = vpop.f32.mrb[2].mxu0 }
 0x117   :  { %v351_v14 = vpop.f32.mrb[3].mxu0  ;;  %v134_v15 = vsel %vm133_vm3, %v128_v11, 0.0 }
 0x118   :  { %135 = vadd.xlane.f32.xlu0 %v134_v15 }
 0x1a5   :  { %v136_v16 = vpop.xlane.xlu0 %135 }
 0x1a6   :  { %v138_v17 = vmul.f32 0.03125, %v136_v16 }
 0x1a8   :  { %v139_v18 = vsub.f32 %v128_v11, %v138_v17 }
 0x1aa   :  { %v140_v19 = vmul.f32 %v139_v18, %v139_v18 }
 0x1ac   :  { %v141_v20 = vsel %vm133_vm3, %v140_v19, 0.0 }
 0x1ad   :  { %142 = vadd.xlane.f32.xlu0 %v141_v20 }
 0x1c3   :  { %254 = vrot.lane.b32.xlu0 %v252_v23, %s512_s16 }
 0x23a   :  { %v143_v24 = vpop.xlane.xlu0 %142 }
 0x23b   :  { %v144_v25 = vmul.f32 0.03125, %v143_v24 }
 0x23d   :  { %v145_v26 = vadd.f32 1e-05, %v144_v25 }
 0x23e   :  { %v255_v2 = vpop.permute.xlu0 %254 }
 0x23f   :  { %375 = vrsqrt.f32 %v145_v26 }
 0x249   :  { %v376_v30 = vpop.eup %375 }
 0x24a   :  { %v147_v32 = vmul.f32 %v376_v30, %v139_v18 }
 0x24c   :  { %v152_v33 = vmul.f32 %v151_v29, %v147_v32 }
 0x24e   :  { %v157_v34 = vadd.f32 %v156_v31, %v152_v33 }
 0x250   :  { %v158_v35 = vand.u32 2147483647, %v157_v34  ;;  %vm162_vm4 = vcmp.ge.f32.partialorder %v157_v34, 0.0 }
 0x252   :  { %v159_v36 = vsub.f32 0.0, %v158_v35 }
 0x254   :  { %v160_v37 = vmul.f32 1.442695, %v159_v36 }
 0x256   :  { %377 = vpow2.f32 %v160_v37 }
 0x260   :  { %v378_v38 = vpop.eup %377 }
 0x261   :  { %v163_v39 = vadd.f32 1.0, %v378_v38 }
 0x263   :  { %379 = vrcp.f32 %v163_v39 }
 0x26d   :  { %v380_v40 = vpop.eup %379 }
 0x26e   :  { %v166_v41 = vmul.f32 %v380_v40, %v378_v38 }
 0x270   :  { %v167_v42 = vsel %vm162_vm4, %v380_v40, %v166_v41 }
 0x271   :  { %v168_v43 = vmul.f32 %v167_v42, %v157_v34 }
 0x273   :  { %v169_v44 = vpack.c.bf16 %v168_v43, %v168_v43 }
 0x275   :  { %357 = vmatmul.mubr.msk.bf16.vlgmr.msra.gmra.mrb[0].mxu1 %vm133_vm3, %v169_v44 }
 0x348   :  { %v230_v46 = vpop.f32.mrb[0].mxu1 }
 0x349   :  { %v231_v47 = vadd.f32 %v333_v45, %v230_v46  ;;  %v358_v48 = vpop.f32.mrb[1].mxu1 }
 0x34a   :  { %v233_v49 = vpop.f32.mrb[2].mxu1 }
 0x34b   :  { %v237_v50 = vand.u32 2147483647, %v231_v47  ;;  %v359_v51 = vpop.f32.mrb[3].mxu1  ;;  %v266_v52 = vmul.f32 %v231_v47, %v231_v47  ;;  %v236_v63 = vmax.f32 %v231_v47, 0.0 }
 0x34d   :  { %v238_v53 = vsub.f32 0.0, %v237_v50  ;;  %268 = vrot.lane.b32.xlu1 %v266_v52, %s512_s16 }
 0x34f   :  { %v239_v54 = vmul.f32 1.442695, %v238_v53 }
 0x351   :  { %381 = vpow2.f32 %v239_v54 }
 0x35b   :  { %v382_v55 = vpop.eup %381 }
 0x35c   :  { %v241_v56 = vadd.f32 1.0, %v382_v55  ;;  %v244_v57 = vmul.f32 -0.5, %v382_v55  ;;  %v247_v59 = vand.u32 2147483647, %v382_v55 }
 0x35e   :  { %383 = vlog2.f32 %v241_v56  ;;  %v245_v58 = vadd.f32 1.0, %v244_v57  ;;  %vm248_vm5 = vcmp.lt.f32.partialorder %v247_v59, 0.0004427343 }
 0x360   :  { %v246_v62 = vmul.f32 %v382_v55, %v245_v58 }
 0x368   :  { %v384_v60 = vpop.eup %383 }
 0x369   :  { %v243_v61 = vmul.f32 0.6931472, %v384_v60 }
 0x36b   :  { %v249_v0 = vsel %vm248_vm5, %v246_v62, %v243_v61 }
 0x36c   :  { %v250_v1 = vadd.f32 %v249_v0, %v236_v63 }
 0x36e   :  { %v251_v3 = vadd.f32 1e-06, %v250_v1 }
 0x370   :  { %v257_v4 = vmul.f32 %v255_v2, %v251_v3  ;;  %385 = vlog2.f32 %v251_v3  ;;  %v265_v6 = vmul.f32 %v251_v3, %v251_v3 }
 0x372   :  { %259 = vrot.lane.b32.xlu0 %v257_v4, %s513_s4 }
 0x37a   :  { %v386_v5 = vpop.eup %385 }
 0x37b   :  { %v274_v7 = vmul.f32 0.6931472, %v386_v5 }
 0x37d   :  { %v275_v11 = vmul.f32 2.0, %v274_v7 }
 0x3bf   :  { %v269_v8 = vpop.permute.xlu1 %268 }
 0x3c0   :  { %v271_v9 = vadd.f32 %v269_v8, %v265_v6 }
 0x3c2   :  { %v337_v10 = vadd.f32 -1.0, %v271_v9 }
 0x3c4   :  { %v276_v12 = vsub.f32 %v337_v10, %v275_v11 }
 0x3c6   :  { %278 = vrot.lane.b32.xlu1 %v276_v12, %s513_s4 }
 0x3e4   :  { %v260_v13 = vpop.permute.xlu0 %259 }
 0x3e5   :  { %v262_v14 = vadd.f32 %v260_v13, %v231_v47 }
 0x3e7   :  { %264 = vst.msk [vmem:[#allocation8] sm:$0xff] %vm263_vm6, %v262_v14 }
 0x438   :  { %v279_v15 = vpop.permute.xlu1 %278 }
 0x439   :  { %v281_v16 = vsel %vm263_vm6, %v279_v15, 0.0 }
 0x43a   :  { %282 = vadd.xlane.f32.xlu1 %v281_v16 }
 0x43b   :  { %464 = shalt.err (!%p461_p0)
}
 0x43c   :  { %s465_s23 = scalar_lea.hbm %s642_s6, 128 }
 0x43d   :  { %p466_p1 = scmp.ne.s32.totalorder %s642_s6, %s465_s23  ;;  %p469_p2 = scmp.lt.u32.totalorder %s465_s23, %s642_s6 }
 0x43f   :  { %p471_p3 = pnand %p469_p2, %p466_p1 }
 0x441   :  { %474 = shalt.err (!%p471_p3)
}
 0x442   :  { %309 = dma.vmem_to_hbm [thread:$0]  %s307_s19, 128, %s642_s6, [#allocation4]   ;;  %vm298_vm7 = vcmask 0  }
 0x443   :  { %s515_s29 = smov [#allocation9]  }
 0x444   :  { %s316_s30 = sshll.u32 %s515_s29, 4  ;;  %s317_s30 = int_to_ptr.vmem [resolvable:$true] %s316_s30 }
 0x445   :  { %s475_s8 = scalar_lea.vmem %s317_s30, 16  ;;  %s479_s9 = scalar_lea.vmem %s317_s30, 32 }
 0x446   :  { %p476_p4 = scmp.ne.s32.totalorder %s317_s30, %s475_s8  ;;  %p480_p5 = scmp.lt.s32.totalorder %s317_s30, %s317_s30 }
 0x447   :  { %p481_p6 = scmp.lt.s32.totalorder %s479_s9, %s475_s8 }
 0x449   :  { %p482_p7 = por %p481_p6, %p480_p5 }
 0x44b   :  { %p483_p8 = pnand %p482_p7, %p476_p4 }
 0x4c7   :  { %v283_v17 = vpop.xlane.xlu1 %282 }
 0x4c8   :  { %v284_v18 = vmul.f32 0.5, %v283_v17 }
 0x4ca   :  { %v292_v19 = vrot.slane %v284_v18, 4 }
 0x4cc   :  { %v293_v20 = vadd.f32 %v292_v19, %v284_v18 }
 0x4ce   :  { %v294_v21 = vrot.slane %v293_v20, 2 }
 0x4d0   :  { %v295_v22 = vadd.f32 %v294_v21, %v293_v20 }
 0x4d2   :  { %v296_v23 = vrot.slane %v295_v22, 1 }
 0x4d4   :  { %v297_v24 = vadd.f32 %v296_v23, %v295_v22 }
 0x4d6   :  { %299 = vst.msk [vmem:[#allocation9] sm:$0x1] %vm298_vm7, %v297_v24 }
 0x4d7   :  { %486 = shalt.err (!%p483_p8)
}
 0x4d8   :  { %s487_s13 = scalar_lea.hbm %s643_s7, 16 }
 0x4d9   :  { %p488_p9 = scmp.ne.s32.totalorder %s643_s7, %s487_s13  ;;  %p491_p10 = scmp.lt.u32.totalorder %s487_s13, %s643_s7 }
 0x4db   :  { %p493_p11 = pnand %p491_p10, %p488_p9 }
 0x4dd   :  { %496 = shalt.err (!%p493_p11)
}
 0x4de   :  { %319 = dma.vmem_to_hbm [thread:$0]  %s317_s30, 16, %s643_s7, [#allocation10]  }
 0x4df   :  { %501 = dma.done.wait [#allocation4], 128  }
 0x4e0   :  { %502 = vsyncadd [#allocation4], 4294967168 }
 0x4e1   :  { %503 = dma.done.wait [#allocation10], 16  }
 0x4e2   :  { %504 = vsyncadd [#allocation10], 4294967280 }
 0x4e3   :  { %326 = vsyncpa [#allocation3], 1 }
 0x4e4   :  { %327 = vsyncpa [#allocation6], 1 }
 0x4e5   :  { %328 = vsyncpa [#allocation4], 1 }
 0x4e6   :  { %329 = vsyncpa [#allocation10], 1 }

</bundles_post_ra>
